<compile_context>
chip_gen: v7x
topology: tpu7x:2x2x1
jax: 0.10.0
libtpu: 0.0.40
codegen_flags: <defaults>
</compile_context>

<pallas_src>
import jax
import jax.numpy as jnp
from jax.experimental import pallas as pl
from jax.experimental.pallas import tpu as pltpu


def mlp_kernel(x_ref, w_ref, b_ref, o_ref):
    # x_ref: (1, dim, t_hw)      -- NCHW input viewed as (N, dim, H*W); spatial on lanes.
    # w_ref: (dim, embed_dim)    -- full weight (PyTorch (embed_dim, dim) transposed once).
    # b_ref: (1, embed_dim)      -- bias, f32.
    # o_ref: (1, t_hw, embed_dim)-- written directly in the module's output layout.
    x = x_ref[0]                                   # (dim, t_hw), contiguous lane-dense load
    # Contract channels: (t_hw, dim) @ (dim, embed_dim) -> (t_hw, embed_dim) on the MXU.
    y = jnp.dot(x.T, w_ref[...], preferred_element_type=jnp.float32)
    y = y + b_ref[...]                             # broadcast bias over rows (f32)
    o_ref[0] = y.astype(o_ref.dtype)


def _pick_spatial_tile(hw, max_thw):
    """Largest lane-dense spatial tile that evenly divides H*W."""
    if hw <= max_thw:
        return hw
    for t in (2048, 1024, 512, 256, 128):
        if t <= max_thw and hw % t == 0:
            return t
    # TODO(synk): ragged H*W (not a multiple of 128) falls back to one tile per batch.
    return hw


def segformer_mlp_forward(x_nchw, weight, bias, *, max_thw=2048):
    """Forward of SegFormer MLP: x.flatten(2).transpose(1, 2) @ weight.T + bias.

    x_nchw: (N, dim, H, W); weight: (embed_dim, dim); bias: (embed_dim,).
    Returns (N, H*W, embed_dim), same dtype as the input.
    """
    N, dim, H, W = x_nchw.shape
    embed_dim = weight.shape[0]
    HW = H * W

    # Free view (no data movement): NCHW flatten(2) is already (N, dim, H*W).
    x3d = x_nchw.reshape(N, dim, HW)
    w = weight.T                                       # (dim, embed_dim); tiny, one-time
    b = bias.astype(jnp.float32).reshape(1, embed_dim)

    t_hw = _pick_spatial_tile(HW, max_thw)
    grid = (N, HW // t_hw)
    out_dtype = x_nchw.dtype

    itemsize = jnp.dtype(out_dtype).itemsize
    cost = pl.CostEstimate(
        flops=2 * N * HW * dim * embed_dim,
        transcendentals=0,
        bytes_accessed=(N * dim * HW * itemsize            # x
                        + dim * embed_dim * 4               # w
                        + N * HW * embed_dim * itemsize),   # out
    )

    return pl.pallas_call(
        mlp_kernel,
        out_shape=jax.ShapeDtypeStruct((N, HW, embed_dim), out_dtype),
        grid_spec=pltpu.PrefetchScalarGridSpec(
            num_scalar_prefetch=0,
            grid=grid,
            in_specs=[
                pl.BlockSpec((1, dim, t_hw), lambda n, s: (n, 0, s)),      # x tile
                pl.BlockSpec((dim, embed_dim), lambda n, s: (0, 0)),       # full weight
                pl.BlockSpec((1, embed_dim), lambda n, s: (0, 0)),         # bias
            ],
            out_specs=pl.BlockSpec((1, t_hw, embed_dim), lambda n, s: (n, s, 0)),
        ),
        compiler_params=pltpu.CompilerParams(
            dimension_semantics=("parallel", "parallel"),
            vmem_limit_bytes=64 * 1024 * 1024,
        ),
        cost_estimate=cost,
    )(x3d, w, b)


if __name__ == "__main__":
    # Small shapes consistent with the module: batch=2, dim=4, spatial 16x16, embed_dim=32.
    N, dim, H, W = 2, 4, 16, 16
    embed_dim = 32

    key = jax.random.PRNGKey(0)
    kx, kw, kb = jax.random.split(key, 3)
    x = jax.random.normal(kx, (N, dim, H, W), dtype=jnp.float32)
    weight = 0.1 * jax.random.normal(kw, (embed_dim, dim), dtype=jnp.float32)
    bias = 0.1 * jax.random.normal(kb, (embed_dim,), dtype=jnp.float32)

    out = segformer_mlp_forward(x, weight, bias)
    out = jax.block_until_ready(out)

    # Pure-JAX reference: x.flatten(2).transpose(1, 2) @ W.T + b.
    xr = jnp.transpose(x.reshape(N, dim, H * W), (0, 2, 1))          # (N, HW, dim)
    ref = jnp.einsum("nsd,ed->nse", xr, weight,
                     precision=jax.lax.Precision.HIGHEST) + bias[None, None, :]

    assert out.shape == (N, H * W, embed_dim)
    assert jnp.allclose(out, ref, atol=1e-3, rtol=1e-3), float(jnp.max(jnp.abs(out - ref)))

    print("KERNEL_OK")
</pallas_src>

<mosaic_0001>
module attributes {stable_mosaic.version = 11 : i64} {
  func.func @mlp_kernel(%arg0: i32, %arg1: i32, %arg2: memref<1x4x256xf32, #tpu.memory_space<vmem>>, %arg3: memref<4x32xf32, #tpu.memory_space<vmem>>, %arg4: memref<1x32xf32, #tpu.memory_space<vmem>>, %arg5: memref<1x256x32xf32, #tpu.memory_space<vmem>>) attributes {dimension_semantics = [#tpu.dimension_semantics<parallel>, #tpu.dimension_semantics<parallel>], iteration_bounds = array<i64: 2, 1>, scalar_prefetch = 0 : i64, scratch_operands = 0 : i64, tpu.core_type = #tpu.core_type<tc>, window_params = [{transform_indices = @transform_0, window_bounds = array<i64: 1, 4, 256>}, {pipeline_mode = #tpu.pipeline_mode<synchronous>, transform_indices = @transform_1, window_bounds = array<i64: 4, 32>}, {pipeline_mode = #tpu.pipeline_mode<synchronous>, transform_indices = @transform_2, window_bounds = array<i64: 1, 32>}, {transform_indices = @transform_3, window_bounds = array<i64: 1, 256, 32>}]} {
    %c0 = arith.constant 0 : index
    %c0_0 = arith.constant 0 : index
    %c0_1 = arith.constant 0 : index
    %0 = vector.load %arg2[%c0, %c0_0, %c0_1] : memref<1x4x256xf32, #tpu.memory_space<vmem>>, vector<1x4x256xf32>
    %1 = vector.shape_cast %0 : vector<1x4x256xf32> to vector<4x256xf32>
    %2 = tpu.transpose %1, [1, 0] : vector<4x256xf32> -> vector<256x4xf32>
    %c0_2 = arith.constant 0 : index
    %c0_3 = arith.constant 0 : index
    %3 = vector.load %arg3[%c0_2, %c0_3] : memref<4x32xf32, #tpu.memory_space<vmem>>, vector<4x32xf32>
    %cst = arith.constant dense<0.000000e+00> : vector<256x32xf32>
    %4 = tpu.matmul %2, %3, %cst {dimension_numbers = #tpu.dot_dimension_numbers<[1], [0], [0], [1], [0, 0, 1, 1], [], []>} : vector<256x4xf32>, vector<4x32xf32>, vector<256x32xf32> -> vector<256x32xf32>
    %c0_4 = arith.constant 0 : index
    %c0_5 = arith.constant 0 : index
    %5 = vector.load %arg4[%c0_4, %c0_5] : memref<1x32xf32, #tpu.memory_space<vmem>>, vector<1x32xf32>
    %6 = vector.broadcast %5 : vector<1x32xf32> to vector<256x32xf32>
    %7 = arith.addf %4, %6 : vector<256x32xf32>
    %c0_6 = arith.constant 0 : index
    %c0_7 = arith.constant 0 : index
    %c0_8 = arith.constant 0 : index
    %8 = vector.load %arg5[%c0_6, %c0_7, %c0_8] : memref<1x256x32xf32, #tpu.memory_space<vmem>>, vector<1x256x32xf32>
    %9 = vector.shape_cast %8 : vector<1x256x32xf32> to vector<256x32xf32>
    %10 = vector.shape_cast %7 : vector<256x32xf32> to vector<1x256x32xf32>
    tpu.vector_store %arg5[%c0_6, %c0_7, %c0_8], %10 {strides = array<i32>} : memref<1x256x32xf32, #tpu.memory_space<vmem>>, vector<1x256x32xf32>,
    return
  }
  func.func @transform_0(%arg0: i32, %arg1: i32) -> (i32, i32, i32) {
    %c0_i32 = arith.constant 0 : i32
    %c0_i32_0 = arith.constant 0 : i32
    return %arg0, %c0_i32, %arg1 : i32, i32, i32
  }
  func.func @transform_1(%arg0: i32, %arg1: i32) -> (i32, i32) {
    %c0_i32 = arith.constant 0 : i32
    %c0_i32_0 = arith.constant 0 : i32
    %c0_i32_1 = arith.constant 0 : i32
    return %c0_i32, %c0_i32_0 : i32, i32
  }
  func.func @transform_2(%arg0: i32, %arg1: i32) -> (i32, i32) {
    %c0_i32 = arith.constant 0 : i32
    %c0_i32_0 = arith.constant 0 : i32
    %c0_i32_1 = arith.constant 0 : i32
    return %c0_i32, %c0_i32_0 : i32, i32
  }
  func.func @transform_3(%arg0: i32, %arg1: i32) -> (i32, i32, i32) {
    %c0_i32 = arith.constant 0 : i32
    %c0_i32_0 = arith.constant 0 : i32
    return %arg0, %arg1, %c0_i32 : i32, i32, i32
  }
}

</mosaic_0001>

<bundles_post_ra>
// kernel: tpu_custom_call.1
= control target key start
LH: loop header
LB: loop body
LE: loop exit
PB: predicated region body
PF: predicated region fallthrough
CT: control target
= control target key end

     0   :  { %8 = vsyncpa [#allocation3], 0  ;;  %s1596_s0 = inlined_call_operand.hbm [shape: f32[2,4,256], index: 0, kind: input, shape index: {}]   ;;  %s1597_s1 = inlined_call_operand.hbm [shape: f32[4,32], index: 1, kind: input, shape index: {}]   ;;  %s1598_s2 = inlined_call_operand.hbm [shape: f32[1,32], index: 2, kind: input, shape index: {}]   ;;  %s1599_s3 = inlined_call_operand.hbm [shape: f32[2,256,32], index: 3, kind: output, shape index: {}]  }
   0x1   :  { %10 = vsyncpa [#allocation3 + $0x1], 0 }
   0x2   :  { %11 = vsyncpa [#allocation6], 0 }
   0x3   :  { %12 = vsyncpa [#allocation4], 0 }
   0x4   :  { %14 = vsyncpa [#allocation4 + $0x1], 0  ;;  %s1216_s12 = smov 0   ;;  %s1218_s13 = smov 0  }
   0x5   :  { %s1220_s14 = smov 0   ;;  %s1222_s15 = smov 0  }
   0x6   :  { %s1224_s16 = smov 0   ;;  %s1226_s17 = smov 0  }
   0x7 LB: > { %s789_s18 = sadd.s32 4294967295, %s1188_s17   ;;  %s790_s19 = sadd.s32 4294967294, %s1188_s17   ;;  %s1188_s17 = sphi %s1226_s17, %s20_s17   ;;  %s1184_s16 = sphi %s1224_s16, %s1622_s16   ;;  %s1180_s15 = sphi %s1222_s15, %s1621_s15   ;;  %s1176_s14 = sphi %s1220_s14, %s1620_s14   ;;  %s1172_s13 = sphi %s1218_s13, %s1619_s13   ;;  %s1168_s12 = sphi %s1216_s12, %s1618_s12  }
   0x8   : > { %p54_p0 = scmp.ne.s32.totalorder %s1172_s13, %s1168_s12  ;;  %p1250_p1 = scmp.eq.s32.totalorder %s789_s18, 0 }
   0x9   : > { %p1254_p2 = scmp.eq.s32.totalorder %s789_s18, 1  ;;  %p128_p3 = scmp.eq.s32.totalorder %s790_s19, 1 }
   0xa   : > { %s1604_s20 = scalar_select %p1250_p1, 1, 0 }
   0xb   : > { %s1605_s21 = scalar_select %p1254_p2, 1, 0 }
   0xc   : > { %p1260_p4 = por %p1250_p1, %p54_p0  ;;  %p791_p5 = scmp.ge.s32.totalorder %s1188_s17, 1 }
   0xd   : > { %p1265_p6 = por %p128_p3, %p54_p0  ;;  %p135_p7 = scmp.lt.s32.totalorder %s1188_s17, 3 }
   0xe   : > { %s1606_s22 = scalar_select %p1260_p4, 1, 0 }
   0xf   : > { %s1607_s23 = scalar_select %p1265_p6, 1, 0 }
  0x10   : > { %p1270_p8 = pnand %p791_p5, %p135_p7  ;;  %s1190_s25 = smov [#allocation5]  }
  0x11   : > { %s148_s26 = sshll.u32 %s1190_s25, 4  ;;  %s1191_s27 = smov [#allocation7]   ;;  %s149_s26 = int_to_ptr.vmem [resolvable:$true] %s148_s26 }
  0x12   : > { %s1608_s24 = scalar_select %p1270_p8, 1, 0 }
  0x13   : > { %p941_p10 = pneg %p1270_p8  ;;  %s159_s28 = sshll.u32 %s1191_s27, 4  ;;  %s1283_s28 = int_to_ptr.vmem [resolvable:$true] %s159_s28 }
  0x14   : > { %s1016_s5 = scalar_lea.hbm %s1597_s1, 64 }
  0x15   : > { %p1279_p11 = pnand %p941_p10, %p1250_p1  ;;  %p1017_p12 = scmp.ne.s32.totalorder %s1597_s1, %s1016_s5 }
  0x16   : > { %p1023_p5 = scmp.lt.u32.totalorder %s1016_s5, %s1597_s1 }
  0x17   : > { %p1018_p13 = pneg %p1279_p11 }
  0x19   : > { %p1019_p0 = pnand %p1018_p13, %p1017_p12 }
  0x1b   : > { %p1020_p3 = pneg %p1019_p0 }
  0x1d   : > { %p1025_p7 = pnand %p1023_p5, %p1020_p3 }
  0x1f   : > { %1028 = shalt.err (!%p1025_p7)
}
  0x20   : > { %s1029_s10 = scalar_lea.vmem %s149_s26, 64  ;;  %p1037_p1 = scmp.lt.s32.totalorder %s149_s26, %s149_s26 }
  0x21   : > { %p1030_p10 = scmp.ne.s32.totalorder %s149_s26, %s1029_s10  ;;  %p1038_p4 = scmp.lt.s32.totalorder %s1029_s10, %s1029_s10 }
  0x23   : > { %p1032_p9 = pnand %p1030_p10, %p1018_p13  ;;  %p1039_p8 = por %p1038_p4, %p1037_p1 }
  0x25   : > { %p1033_p6 = pneg %p1032_p9 }
  0x27   : > { %p1040_p2 = pnand %p1039_p8, %p1033_p6 }
  0x29   : > { %1043 = shalt.err (!%p1040_p2)
}
  0x2a   : > { %944 = dma.hbm_to_vmem [thread:$0]  (!%p1279_p11), %s1597_s1, 64, %s149_s26, [#allocation6]  }
  0x2b   : > { %s1044_s27 = scalar_lea.hbm %s1598_s2, 16 }
  0x2c   : > { %p1045_p9 = scmp.ne.s32.totalorder %s1598_s2, %s1044_s27  ;;  %p1051_p2 = scmp.lt.u32.totalorder %s1044_s27, %s1598_s2 }
  0x2e   : > { %p1047_p1 = pnand %p1045_p9, %p1018_p13 }
  0x30   : > { %p1048_p4 = pneg %p1047_p1 }
  0x32   : > { %p1053_p6 = pnand %p1051_p2, %p1048_p4 }
  0x34   : > { %1056 = shalt.err (!%p1053_p6)
}
  0x35   : > { %s1057_s26 = scalar_lea.vmem %s1283_s28, 16  ;;  %s1064_s7 = scalar_lea.vmem %s1283_s28, 32 }
  0x36   : > { %p1058_p8 = scmp.ne.s32.totalorder %s1283_s28, %s1057_s26  ;;  %p1065_p3 = scmp.lt.s32.totalorder %s1283_s28, %s1283_s28 }
  0x37   : > { %p1066_p5 = scmp.lt.s32.totalorder %s1064_s7, %s1057_s26 }
  0x38   : > { %p1060_p12 = pnand %p1058_p8, %p1018_p13 }
  0x39   : > { %p1067_p7 = por %p1066_p5, %p1065_p3 }
  0x3a   : > { %p1061_p0 = pneg %p1060_p12 }
  0x3c   : > { %p1068_p10 = pnand %p1067_p7, %p1061_p0 }
  0x3e   : > { %1071 = shalt.err (!%p1068_p10)
}
  0x3f   : > { %947 = dma.hbm_to_vmem [thread:$0]  (!%p1279_p11), %s1598_s2, 16, %s1283_s28, [#allocation6]  }
  0x40   : > { %s32_s10 = sadd.s32 1, %s1184_s16  ;;  %s41_s11 = sadd.s32 1, %s1176_s14 }
  0x41   : > { %p34_p13 = scmp.ge.s32.totalorder %s32_s10, 2  ;;  %p48_p9 = scmp.ne.s32.totalorder %s1176_s14, %s1172_s13 }
  0x42   : > { %p49_p1 = scmp.eq.s32.totalorder %s1188_s17, 0  ;;  %p958_p4 = scmp.lt.s32.totalorder %s1188_s17, 2 }
  0x43   : > { %s1624_s10 = smov (%p34_p13, %s32_s10), 0  ;;  %p1610_p6 = scmp.ne.s32.totalorder %s1605_s21, 0 }
  0x44   : > { %p50_p2 = por %p49_p1, %p48_p9  ;;  %s36_s18 = ssub.s32 %s1184_s16, %s1624_s10 }
  0x45   : > { %p1343_p8 = por %p1610_p6, %p48_p9  ;;  %s170_s19 = sand.u32 1, %s1176_s14  }
  0x46   : > { %p39_p12 = scmp.eq.s32.totalorder %s36_s18, 0  ;;  %s795_s28 = sshll.u32 %s170_s19, 3 }
  0x47   : > { %s842_s25 = sshll.u32 %s1184_s16, 7  ;;  %s174_s21 = scalar_lea.vmem [#allocation2], %s795_s28 }
  0x48   : > { %s1352_s27 = scalar_select %p39_p12, %s1176_s14, %s41_s11  }
  0x49   : > { %s1357_s5 = scalar_lea.hbm %s1596_s0, %s842_s25  ;;  %s184_s6 = sshll.u32 %s174_s21, 4  ;;  %s1365_s6 = int_to_ptr.vmem [resolvable:$true] %s184_s6 }
  0x4a   : > { %p1361_p11 = pnand %p958_p4, %p50_p2  ;;  %s171_s7 = scalar_lea.sflag [#allocation3], %s170_s19 }
  0x4b   : > { %s1072_s8 = scalar_lea.hbm %s1357_s5, 128  ;;  %s1077_s18 = scalar_lea.hbm %s1596_s0, 256 }
  0x4c   : > { %p1073_p0 = scmp.ne.s32.totalorder %s1357_s5, %s1072_s8  ;;  %p1074_p3 = pneg %p1361_p11 }
  0x4d   : > { %p1078_p10 = scmp.lt.u32.totalorder %s1357_s5, %s1596_s0  ;;  %p1079_p13 = scmp.lt.u32.totalorder %s1077_s18, %s1072_s8 }
  0x4e   : > { %p1075_p5 = pnand %p1074_p3, %p1073_p0  ;;  %p1081_p1 = scmp.lt.u32.totalorder %s1072_s8, %s1357_s5 }
  0x4f   : > { %p1080_p9 = por %p1079_p13, %p1078_p10 }
  0x50   : > { %p1076_p7 = pneg %p1075_p5 }
  0x51   : > { %p1082_p4 = por %p1081_p1, %p1080_p9 }
  0x53   : > { %p1083_p2 = pnand %p1082_p4, %p1076_p7 }
  0x55   : > { %1086 = shalt.err (!%p1083_p2)
}
  0x56   : > { %s1087_s19 = scalar_lea.vmem %s1365_s6, 128  ;;  %s1192_s30 = smov [#allocation2]  }
  0x57   : > { %p1088_p6 = scmp.ne.s32.totalorder %s1365_s6, %s1087_s19  ;;  %s1092_s4 = sshll.u32 %s1192_s30, 4  ;;  %s1093_s4 = int_to_ptr.vmem [resolvable:$false] %s1092_s4 }
  0x58   : > { %s1094_s21 = scalar_lea.vmem %s1093_s4, 256  ;;  %p1095_p5 = scmp.lt.s32.totalorder %s1365_s6, %s1093_s4 }
  0x59   : > { %p1090_p12 = pnand %p1088_p6, %p1074_p3  ;;  %p1096_p10 = scmp.lt.s32.totalorder %s1094_s21, %s1087_s19 }
  0x5b   : > { %p1091_p0 = pneg %p1090_p12  ;;  %p1097_p13 = por %p1096_p10, %p1095_p5 }
  0x5d   : > { %p1098_p9 = pnand %p1097_p13, %p1091_p0 }
  0x5f   : > { %1101 = shalt.err (!%p1098_p9)
}
  0x60   : > { %951 = dma.hbm_to_vmem [thread:$0]  (!%p1361_p11), %s1357_s5, 128, %s1365_s6, %s171_s7  }
  0x61   : > { %p1613_p7 = scmp.ne.s32.totalorder %s1608_s24, 0 }
  0x62   : > { %s1395_s8 = sand.u32 (!%p1613_p7), 1, %s1172_s13   ;;  %p1614_p3 = scmp.ne.s32.totalorder (!%p1613_p7), %s1606_s22, 0 }
  0x63   : > { %193 = sbr.rel (%p1613_p7) target bundleno = 594 (0x252), region = 32  ;;  %s799_s9 = sshll.u32 (!%p1613_p7), %s1395_s8, 3 }
  0x64   : > { %s196_s11 = scalar_lea.sflag (!%p1613_p7), [#allocation3], %s1395_s8  ;;  %s199_s18 = scalar_lea.vmem (!%p1613_p7), [#allocation2], %s799_s9 }
  0x6a   : > { %1155 = dma.done.wait (%p1614_p3), %s196_s11, 128  }
  0x6b   : > { %1157 = vsyncadd (%p1614_p3), %s196_s11, 4294967168  ;;  %p1615_p1 = scmp.ne.s32.totalorder %s1604_s20, 0 }
  0x6d   : > { %1159 = dma.done.wait (%p1615_p1), [#allocation6], 80  }
  0x6e   : > { %1161 = vsyncadd (%p1615_p1), [#allocation6], 4294967216  ;;  %v232_v0 = vld [vmem:[%s199_s18] sm:$0xff]  ;;  %v300_v1 = vld [vmem:[#allocation5] sm:$0xf]  ;;  %vm405_vm0 = vcmask 1043456  }
  0x6f   : > { %236 = vxpose.xlu0.b32.start.end [1/1] (short) %v232_v0, 128  ;;  %877 = vmatprep.subr.msk.mxu0 %vm405_vm0, %v300_v1  ;;  %v234_v2 = vcombine.high %v232_v0, %v232_v0  ;;  %vm308_vm1 = vcmask 31744   ;;  %s802_s20 = sshll.u32 %s1395_s8, 8  ;;  %v1440_v35 = vld [vmem:[#allocation7] ss:$0 sm:$0xff]  ;;  %vm634_vm2 = vcmask 261120   ;;  %s843_s24 = sshll.u32 %s1180_s15, 12 }
  0x70   : > { %927 = vmatprep.subr.msk.mxu1 %vm405_vm0, %v300_v1  ;;  %878 = vmatpush3.msk.msra.mxu0 %vm405_vm0, %v300_v1  ;;  %s1444_s22 = scalar_lea.vmem [#allocation8], %s802_s20  ;;  %s1540_s7 = scalar_lea.hbm %s1599_s3, %s843_s24 }
  0x71   : > { %928 = vmatpush3.msk.msra.mxu1 %vm405_vm0, %v300_v1  ;;  %s683_s5 = sshll.u32 %s1444_s22, 4  ;;  %s668_s15 = scalar_lea.sflag [#allocation4], %s1395_s8  ;;  %s1542_s5 = int_to_ptr.vmem [resolvable:$true] %s683_s5 }
  0x72   : > { %s1102_s28 = scalar_lea.vmem %s1542_s5, 4096  ;;  %s1193_s25 = smov [#allocation8]  }
  0x73   : > { %p1103_p11 = scmp.ne.s32.totalorder %s1542_s5, %s1102_s28  ;;  %s1106_s19 = sshll.u32 %s1193_s25, 4  ;;  %s1107_s19 = int_to_ptr.vmem [resolvable:$false] %s1106_s19 }
  0x74   : > { %s1108_s30 = scalar_lea.vmem %s1107_s19, 8192  ;;  %p1109_p6 = scmp.lt.s32.totalorder %s1542_s5, %s1107_s19 }
  0x75   : > { %p1104_p4 = pnand %p1103_p11, %p1343_p8  ;;  %p1110_p12 = scmp.lt.s32.totalorder %s1108_s30, %s1102_s28 }
  0x77   : > { %p1105_p2 = pneg %p1104_p4  ;;  %p1111_p0 = por %p1110_p12, %p1109_p6 }
  0x79   : > { %p1112_p5 = pnand %p1111_p0, %p1105_p2 }
  0xac   : > { %268 = vxpose.xlu0.b32.start.end [1/1] (short) %v234_v2, 128 }
  0xef   : > { %v252_v3 = vpop.trf.xlu0 }
  0xf0   : > { %879 = vmatprep.mubr.msk.f32.mxu0 %vm308_vm1, %v252_v3 }
  0xf3   : > { %v253_v4 = vpop.trf.xlu0 }
  0xf4   : > { %880 = vmatmul.mubr.msk.f32.vlgmr.msra.gmra.mrb[0].mxu0 %vm308_vm1, %v253_v4 }
  0xf7   : > { %v254_v5 = vpop.trf.xlu0 }
  0xf8   : > { %882 = vmatprep.mubr.msk.f32.mxu0 %vm308_vm1, %v254_v5 }
  0xfb   : > { %v255_v6 = vpop.trf.xlu0 }
  0xfc   : > { %883 = vmatmul.mubr.msk.f32.gmra.mrb[2].mxu0 %vm308_vm1, %v255_v6 }
  0xff   : > { %v256_v7 = vpop.trf.xlu0 }
 0x100   : > { %885 = vmatprep.mubr.msk.f32.mxu0 %vm308_vm1, %v256_v7 }
 0x103   : > { %v257_v8 = vpop.trf.xlu0 }
 0x104   : > { %886 = vmatmul.mubr.msk.f32.gmra.mrb[4].mxu0 %vm308_vm1, %v257_v8 }
 0x107   : > { %v258_v9 = vpop.trf.xlu0 }
 0x108   : > { %888 = vmatprep.mubr.msk.f32.mxu0 %vm308_vm1, %v258_v9 }
 0x10b   : > { %v259_v10 = vpop.trf.xlu0 }
 0x10c   : > { %889 = vmatmul.mubr.msk.f32.gmra.mrb[6].mxu0 %vm308_vm1, %v259_v10 }
 0x10f   : > { %v260_v11 = vpop.trf.xlu0 }
 0x110   : > { %891 = vmatprep.mubr.msk.f32.mxu0 %vm308_vm1, %v260_v11 }
 0x113   : > { %v261_v12 = vpop.trf.xlu0 }
 0x114   : > { %892 = vmatmul.mubr.msk.f32.gmra.mrb[8].mxu0 %vm308_vm1, %v261_v12 }
 0x117   : > { %v262_v13 = vpop.trf.xlu0 }
 0x118   : > { %894 = vmatprep.mubr.msk.f32.mxu0 %vm308_vm1, %v262_v13 }
 0x11b   : > { %v263_v14 = vpop.trf.xlu0 }
 0x11c   : > { %895 = vmatmul.mubr.msk.f32.gmra.mrb[10].mxu0 %vm308_vm1, %v263_v14 }
 0x11f   : > { %v264_v15 = vpop.trf.xlu0 }
 0x120   : > { %897 = vmatprep.mubr.msk.f32.mxu0 %vm308_vm1, %v264_v15 }
 0x123   : > { %v265_v16 = vpop.trf.xlu0 }
 0x124   : > { %898 = vmatmul.mubr.msk.f32.gmra.mrb[12].mxu0 %vm308_vm1, %v265_v16 }
 0x127   : > { %v266_v17 = vpop.trf.xlu0 }
 0x128   : > { %900 = vmatprep.mubr.msk.f32.mxu0 %vm308_vm1, %v266_v17 }
 0x12b   : > { %v267_v18 = vpop.trf.xlu0 }
 0x12c   : > { %901 = vmatmul.mubr.msk.f32.gmra.mrb[14].mxu0 %vm308_vm1, %v267_v18 }
 0x12f   : > { %v284_v19 = vpop.trf.xlu0 }
 0x130   : > { %903 = vmatprep.mubr.msk.f32.mxu1 %vm308_vm1, %v284_v19 }
 0x133   : > { %v285_v20 = vpop.trf.xlu0 }
 0x134   : > { %904 = vmatmul.mubr.msk.f32.vlgmr.msra.gmra.mrb[0].mxu1 %vm308_vm1, %v285_v20 }
 0x137   : > { %v286_v21 = vpop.trf.xlu0 }
 0x138   : > { %906 = vmatprep.mubr.msk.f32.mxu1 %vm308_vm1, %v286_v21 }
 0x13b   : > { %v287_v22 = vpop.trf.xlu0 }
 0x13c   : > { %907 = vmatmul.mubr.msk.f32.gmra.mrb[2].mxu1 %vm308_vm1, %v287_v22 }
 0x13f   : > { %v288_v23 = vpop.trf.xlu0 }
 0x140   : > { %909 = vmatprep.mubr.msk.f32.mxu1 %vm308_vm1, %v288_v23 }
 0x143   : > { %v289_v24 = vpop.trf.xlu0 }
 0x144   : > { %910 = vmatmul.mubr.msk.f32.gmra.mrb[4].mxu1 %vm308_vm1, %v289_v24 }
 0x147   : > { %v290_v25 = vpop.trf.xlu0 }
 0x148   : > { %912 = vmatprep.mubr.msk.f32.mxu1 %vm308_vm1, %v290_v25 }
 0x14b   : > { %v291_v26 = vpop.trf.xlu0 }
 0x14c   : > { %913 = vmatmul.mubr.msk.f32.gmra.mrb[6].mxu1 %vm308_vm1, %v291_v26 }
 0x14f   : > { %v292_v27 = vpop.trf.xlu0 }
 0x150   : > { %915 = vmatprep.mubr.msk.f32.mxu1 %vm308_vm1, %v292_v27 }
 0x153   : > { %v293_v28 = vpop.trf.xlu0 }
 0x154   : > { %916 = vmatmul.mubr.msk.f32.gmra.mrb[8].mxu1 %vm308_vm1, %v293_v28 }
 0x157   : > { %v294_v29 = vpop.trf.xlu0 }
 0x158   : > { %918 = vmatprep.mubr.msk.f32.mxu1 %vm308_vm1, %v294_v29 }
 0x15b   : > { %v295_v30 = vpop.trf.xlu0 }
 0x15c   : > { %919 = vmatmul.mubr.msk.f32.gmra.mrb[10].mxu1 %vm308_vm1, %v295_v30 }
 0x15f   : > { %v296_v31 = vpop.trf.xlu0 }
 0x160   : > { %921 = vmatprep.mubr.msk.f32.mxu1 %vm308_vm1, %v296_v31 }
 0x163   : > { %v297_v32 = vpop.trf.xlu0 }
 0x164   : > { %922 = vmatmul.mubr.msk.f32.gmra.mrb[12].mxu1 %vm308_vm1, %v297_v32 }
 0x167   : > { %v298_v33 = vpop.trf.xlu0 }
 0x168   : > { %924 = vmatprep.mubr.msk.f32.mxu1 %vm308_vm1, %v298_v33 }
 0x16b   : > { %v299_v34 = vpop.trf.xlu0 }
 0x16c   : > { %925 = vmatmul.mubr.msk.f32.gmra.mrb[14].mxu1 %vm308_vm1, %v299_v34 }
 0x1c7   : > { %v881_v36 = vpop.f32.mrb[0].mxu0 }
 0x1c8   : > { %v481_v37 = vadd.f32 %v881_v36, %v1440_v35  ;;  %v475_v38 = vpop.f32.mrb[1].mxu0 }
 0x1c9   : > { %v476_v39 = vadd.f32 %v1440_v35, %v475_v38 }
 0x1ca   : > { %636 = vst.msk [vmem:[%s1444_s22 + $0x8] sm:$0xff] %vm634_vm2, %v481_v37 }
 0x1cb   : > { %635 = vst.msk [vmem:[%s1444_s22] sm:$0xff] %vm634_vm2, %v476_v39 }
 0x1cf   : > { %v884_v40 = vpop.f32.mrb[2].mxu0 }
 0x1d0   : > { %v491_v41 = vadd.f32 %v884_v40, %v1440_v35  ;;  %v485_v42 = vpop.f32.mrb[3].mxu0 }
 0x1d1   : > { %v486_v43 = vadd.f32 %v1440_v35, %v485_v42 }
 0x1d2   : > { %638 = vst.msk [vmem:[%s1444_s22 + $0x18] sm:$0xff] %vm634_vm2, %v491_v41 }
 0x1d3   : > { %637 = vst.msk [vmem:[%s1444_s22 + $0x10] sm:$0xff] %vm634_vm2, %v486_v43 }
 0x1d7   : > { %v887_v44 = vpop.f32.mrb[4].mxu0 }
 0x1d8   : > { %v501_v45 = vadd.f32 %v887_v44, %v1440_v35  ;;  %v495_v46 = vpop.f32.mrb[5].mxu0 }
 0x1d9   : > { %v496_v47 = vadd.f32 %v1440_v35, %v495_v46 }
 0x1da   : > { %640 = vst.msk [vmem:[%s1444_s22 + $0x28] sm:$0xff] %vm634_vm2, %v501_v45 }
 0x1db   : > { %639 = vst.msk [vmem:[%s1444_s22 + $0x20] sm:$0xff] %vm634_vm2, %v496_v47 }
 0x1df   : > { %v890_v48 = vpop.f32.mrb[6].mxu0 }
 0x1e0   : > { %v511_v49 = vadd.f32 %v890_v48, %v1440_v35  ;;  %v505_v50 = vpop.f32.mrb[7].mxu0 }
 0x1e1   : > { %v506_v51 = vadd.f32 %v1440_v35, %v505_v50 }
 0x1e2   : > { %642 = vst.msk [vmem:[%s1444_s22 + $0x38] sm:$0xff] %vm634_vm2, %v511_v49 }
 0x1e3   : > { %641 = vst.msk [vmem:[%s1444_s22 + $0x30] sm:$0xff] %vm634_vm2, %v506_v51 }
 0x1e7   : > { %v893_v52 = vpop.f32.mrb[8].mxu0 }
 0x1e8   : > { %v521_v53 = vadd.f32 %v893_v52, %v1440_v35  ;;  %v515_v54 = vpop.f32.mrb[9].mxu0 }
 0x1e9   : > { %v516_v55 = vadd.f32 %v1440_v35, %v515_v54 }
 0x1ea   : > { %644 = vst.msk [vmem:[%s1444_s22 + $0x48] sm:$0xff] %vm634_vm2, %v521_v53 }
 0x1eb   : > { %643 = vst.msk [vmem:[%s1444_s22 + $0x40] sm:$0xff] %vm634_vm2, %v516_v55 }
 0x1ef   : > { %v896_v56 = vpop.f32.mrb[10].mxu0 }
 0x1f0   : > { %v531_v57 = vadd.f32 %v896_v56, %v1440_v35  ;;  %v525_v58 = vpop.f32.mrb[11].mxu0 }
 0x1f1   : > { %v526_v59 = vadd.f32 %v1440_v35, %v525_v58 }
 0x1f2   : > { %646 = vst.msk [vmem:[%s1444_s22 + $0x58] sm:$0xff] %vm634_vm2, %v531_v57 }
 0x1f3   : > { %645 = vst.msk [vmem:[%s1444_s22 + $0x50] sm:$0xff] %vm634_vm2, %v526_v59 }
 0x1f7   : > { %v899_v60 = vpop.f32.mrb[12].mxu0 }
 0x1f8   : > { %v541_v61 = vadd.f32 %v899_v60, %v1440_v35  ;;  %v535_v62 = vpop.f32.mrb[13].mxu0 }
 0x1f9   : > { %v536_v63 = vadd.f32 %v1440_v35, %v535_v62 }
 0x1fa   : > { %648 = vst.msk [vmem:[%s1444_s22 + $0x68] sm:$0xff] %vm634_vm2, %v541_v61 }
 0x1fb   : > { %647 = vst.msk [vmem:[%s1444_s22 + $0x60] sm:$0xff] %vm634_vm2, %v536_v63 }
 0x1ff   : > { %v902_v0 = vpop.f32.mrb[14].mxu0 }
 0x200   : > { %v551_v1 = vadd.f32 %v902_v0, %v1440_v35  ;;  %v545_v2 = vpop.f32.mrb[15].mxu0 }
 0x201   : > { %v546_v3 = vadd.f32 %v1440_v35, %v545_v2 }
 0x202   : > { %650 = vst.msk [vmem:[%s1444_s22 + $0x78] sm:$0xff] %vm634_vm2, %v551_v1 }
 0x203   : > { %649 = vst.msk [vmem:[%s1444_s22 + $0x70] sm:$0xff] %vm634_vm2, %v546_v3 }
 0x207   : > { %v905_v4 = vpop.f32.mrb[0].mxu1 }
 0x208   : > { %v561_v5 = vadd.f32 %v905_v4, %v1440_v35  ;;  %v555_v6 = vpop.f32.mrb[1].mxu1 }
 0x209   : > { %v556_v7 = vadd.f32 %v1440_v35, %v555_v6 }
 0x20a   : > { %652 = vst.msk [vmem:[%s1444_s22 + $0x88] sm:$0xff] %vm634_vm2, %v561_v5 }
 0x20b   : > { %651 = vst.msk [vmem:[%s1444_s22 + $0x80] sm:$0xff] %vm634_vm2, %v556_v7 }
 0x20f   : > { %v908_v8 = vpop.f32.mrb[2].mxu1 }
 0x210   : > { %v571_v9 = vadd.f32 %v908_v8, %v1440_v35  ;;  %v565_v10 = vpop.f32.mrb[3].mxu1 }
 0x211   : > { %v566_v11 = vadd.f32 %v1440_v35, %v565_v10 }
 0x212   : > { %654 = vst.msk [vmem:[%s1444_s22 + $0x98] sm:$0xff] %vm634_vm2, %v571_v9 }
 0x213   : > { %653 = vst.msk [vmem:[%s1444_s22 + $0x90] sm:$0xff] %vm634_vm2, %v566_v11 }
 0x217   : > { %v911_v12 = vpop.f32.mrb[4].mxu1 }
 0x218   : > { %v581_v13 = vadd.f32 %v911_v12, %v1440_v35  ;;  %v575_v14 = vpop.f32.mrb[5].mxu1 }
 0x219   : > { %v576_v15 = vadd.f32 %v1440_v35, %v575_v14 }
 0x21a   : > { %656 = vst.msk [vmem:[%s1444_s22 + $0xa8] sm:$0xff] %vm634_vm2, %v581_v13 }
 0x21b   : > { %655 = vst.msk [vmem:[%s1444_s22 + $0xa0] sm:$0xff] %vm634_vm2, %v576_v15 }
 0x21f   : > { %v914_v16 = vpop.f32.mrb[6].mxu1 }
 0x220   : > { %v591_v17 = vadd.f32 %v914_v16, %v1440_v35  ;;  %v585_v18 = vpop.f32.mrb[7].mxu1 }
 0x221   : > { %v586_v19 = vadd.f32 %v1440_v35, %v585_v18 }
 0x222   : > { %658 = vst.msk [vmem:[%s1444_s22 + $0xb8] sm:$0xff] %vm634_vm2, %v591_v17 }
 0x223   : > { %657 = vst.msk [vmem:[%s1444_s22 + $0xb0] sm:$0xff] %vm634_vm2, %v586_v19 }
 0x227   : > { %v917_v20 = vpop.f32.mrb[8].mxu1 }
 0x228   : > { %v601_v21 = vadd.f32 %v917_v20, %v1440_v35  ;;  %v595_v22 = vpop.f32.mrb[9].mxu1 }
 0x229   : > { %v596_v23 = vadd.f32 %v1440_v35, %v595_v22 }
 0x22a   : > { %660 = vst.msk [vmem:[%s1444_s22 + $0xc8] sm:$0xff] %vm634_vm2, %v601_v21 }
 0x22b   : > { %659 = vst.msk [vmem:[%s1444_s22 + $0xc0] sm:$0xff] %vm634_vm2, %v596_v23 }
 0x22f   : > { %v920_v24 = vpop.f32.mrb[10].mxu1 }
 0x230   : > { %v611_v25 = vadd.f32 %v920_v24, %v1440_v35  ;;  %v605_v26 = vpop.f32.mrb[11].mxu1 }
 0x231   : > { %v606_v27 = vadd.f32 %v1440_v35, %v605_v26 }
 0x232   : > { %662 = vst.msk [vmem:[%s1444_s22 + $0xd8] sm:$0xff] %vm634_vm2, %v611_v25 }
 0x233   : > { %661 = vst.msk [vmem:[%s1444_s22 + $0xd0] sm:$0xff] %vm634_vm2, %v606_v27 }
 0x237   : > { %v923_v28 = vpop.f32.mrb[12].mxu1 }
 0x238   : > { %v621_v29 = vadd.f32 %v923_v28, %v1440_v35  ;;  %v615_v30 = vpop.f32.mrb[13].mxu1 }
 0x239   : > { %v616_v31 = vadd.f32 %v1440_v35, %v615_v30 }
 0x23a   : > { %664 = vst.msk [vmem:[%s1444_s22 + $0xe8] sm:$0xff] %vm634_vm2, %v621_v29 }
 0x23b   : > { %663 = vst.msk [vmem:[%s1444_s22 + $0xe0] sm:$0xff] %vm634_vm2, %v616_v31 }
 0x23f   : > { %v926_v32 = vpop.f32.mrb[14].mxu1 }
 0x240   : > { %v631_v33 = vadd.f32 %v926_v32, %v1440_v35  ;;  %v625_v34 = vpop.f32.mrb[15].mxu1 }
 0x241   : > { %v626_v36 = vadd.f32 %v1440_v35, %v625_v34 }
 0x242   : > { %666 = vst.msk [vmem:[%s1444_s22 + $0xf8] sm:$0xff] %vm634_vm2, %v631_v33 }
 0x243   : > { %665 = vst.msk [vmem:[%s1444_s22 + $0xf0] sm:$0xff] %vm634_vm2, %v626_v36 }
 0x244   : > { %1115 = shalt.err (!%p1112_p5)
}
 0x245   : > { %s1116_s4 = scalar_lea.hbm %s1540_s7, 4096  ;;  %s1120_s11 = scalar_lea.hbm %s1599_s3, 8192 }
 0x246   : > { %p1117_p10 = scmp.ne.s32.totalorder %s1540_s7, %s1116_s4  ;;  %p1121_p7 = scmp.lt.u32.totalorder %s1540_s7, %s1599_s3 }
 0x247   : > { %p1122_p3 = scmp.lt.u32.totalorder %s1120_s11, %s1116_s4  ;;  %p1124_p11 = scmp.lt.u32.totalorder %s1116_s4, %s1540_s7 }
 0x248   : > { %p1118_p13 = pnand %p1117_p10, %p1343_p8 }
 0x249   : > { %p1123_p1 = por %p1122_p3, %p1121_p7 }
 0x24a   : > { %p1119_p9 = pneg %p1118_p13 }
 0x24b   : > { %p1125_p4 = por %p1124_p11, %p1123_p1 }
 0x24d   : > { %p1126_p2 = pnand %p1125_p4, %p1119_p9 }
 0x24f   : > { %1129 = shalt.err (!%p1126_p2)
}
 0x250   : > { %s1194_s22 = smov 128   ;;  %s1195_s24 = smov 8  }
 0x251   : > { %939 = dma.vmem_to_hbm [thread:$0]  (%p1343_p8), %s1542_s5, 4096, %s1540_s7, %s668_s15, %s1194_s22, %s1194_s22, %s1195_s24  }
 0x252 PF: > { %s698_s6 = sand.u32 1, %s1168_s12   ;;  %p1616_p6 = scmp.ne.s32.totalorder %s1607_s23, 0 }
 0x253   : > { %p1617_p12 = scmp.ge.s32.totalorder %s1188_s17, 2  ;;  %s699_s26 = scalar_lea.sflag [#allocation4], %s698_s6 }
 0x255   : > { %p953_p0 = pnand %p1617_p12, %p1616_p6 }
 0x257   : > { %1163 = dma.done.wait (!%p953_p0), %s699_s26, 4096  }
 0x258   : > { %1165 = vsyncadd (!%p953_p0), %s699_s26, 4294963200  ;;  %s20_s17 = sadd.s32 1, %s1188_s17   ;;  %s1618_s12 = smov %s1172_s13 }
 0x259   : > { %p17_p5 = scmp.ge.s32.totalorder %s20_s17, 4   ;;  %s1619_s13 = smov %s1176_s14 }
 0x25a   : > { %s1620_s14 = smov %s1352_s27  ;;  %s1621_s15 = smov %s1184_s16 }
 0x25b   : > { %s1622_s16 = smov %s1624_s10  ;;  %19 = sbr.rel (!%p17_p5) target bundleno = 7 (0x7), region = 85 }
 0x262   :  { %704 = vsyncpa [#allocation3], 1 }
 0x263   :  { %706 = vsyncpa [#allocation3 + $0x1], 1 }
 0x264   :  { %707 = vsyncpa [#allocation6], 1 }
 0x265   :  { %708 = vsyncpa [#allocation4], 1 }
 0x266   :  { %710 = vsyncpa [#allocation4 + $0x1], 1 }

</bundles_post_ra>
